<compile_context>
chip_gen: v7x
topology: tpu7x:2x2x1
jax: 0.10.0
libtpu: 0.0.40
codegen_flags: <defaults>
</compile_context>

<pallas_src>
import functools

import jax
import jax.numpy as jnp
from jax.experimental import pallas as pl
from jax.experimental.pallas import tpu as pltpu

LN_EPS = 1e-5
VMEM_LIMIT = 32 * 1024 * 1024   # safe scoped-VMEM budget on v5e/v6e/v7x alike


# ----------------------------------------------------------------------------- helpers
def _round_up(x, m):
    return ((x + m - 1) // m) * m


def _erf_fp32(x):
    # Abramowitz & Stegun 7.1.26 (max abs err ~1.5e-7) -> exact-GELU with only exp on EUP.
    a1, a2, a3, a4, a5 = 0.254829592, -0.284496736, 1.421413741, -1.453152027, 1.061405429
    p = 0.3275911
    s = jnp.where(x >= 0.0, 1.0, -1.0)
    ax = jnp.abs(x)
    t = 1.0 / (1.0 + p * ax)
    poly = ((((a5 * t + a4) * t + a3) * t + a2) * t + a1) * t
    return s * (1.0 - poly * jnp.exp(-ax * ax))


def _gelu_exact(x):
    return 0.5 * x * (1.0 + _erf_fp32(x * 0.7071067811865476))


def _layernorm(x, g, b):
    mu = jnp.mean(x, axis=-1, keepdims=True)
    var = jnp.mean(jnp.square(x - mu), axis=-1, keepdims=True)
    return (x - mu) * jax.lax.rsqrt(var + LN_EPS) * g + b


def get_window_size(x_size, window_size):
    use = list(window_size)
    for i in range(len(x_size)):
        if x_size[i] <= window_size[i]:
            use[i] = x_size[i]
    return tuple(use)


# ----------------------------------------------------------------------------- window glue (plain JAX, pure data movement)
def window_partition(x, window_size):
    B, Dp, Hp, Wp, C = x.shape
    wd, wh, ww = window_size
    x = x.reshape(B, Dp // wd, wd, Hp // wh, wh, Wp // ww, ww, C)
    x = jnp.transpose(x, (0, 1, 3, 5, 2, 4, 6, 7))
    return x.reshape(-1, wd * wh * ww, C)


def window_reverse(windows, window_size, B, Dp, Hp, Wp):
    wd, wh, ww = window_size
    x = windows.reshape(B, Dp // wd, Hp // wh, Wp // ww, wd, wh, ww, -1)
    x = jnp.transpose(x, (0, 1, 4, 2, 5, 3, 6, 7))
    return x.reshape(B, Dp, Hp, Wp, -1)


def window_area_partition(x, window_size):
    # Reference-faithful 27-neighbourhood gather (quirks included).  Used ONLY by the
    # pure-JAX self-check path; the Pallas path gathers the neighbourhood in-kernel.
    B, Dp, Hp, Wp, C = x.shape
    assert B == 1, "window_area_partition only supports B == 1 (as in the reference)"
    wd, wh, ww = window_size
    d, h, w = Dp // wd, Hp // wh, Wp // ww
    xw = x.reshape(B, d, wd, h, wh, w, ww, C)
    xw = jnp.transpose(xw, (0, 1, 3, 5, 2, 4, 6, 7))[0]          # (d, h, w, wd, wh, ww, C)
    a = jnp.pad(xw, ((1, 1), (1, 1), (1, 1), (0, 0), (0, 0), (0, 0), (0, 0)))
    nwin = d * h * w
    slots = []
    for idx in range(27):
        if idx == 20:   # reference bug: slot 20 never written -> stays zero
            slots.append(jnp.zeros((nwin, wd, wh, ww, C), x.dtype))
            continue
        od, oh, ow = idx // 9, (idx // 3) % 3, idx % 3
        sl = a[od:od + d, oh:oh + h, ow:ow + w]
        slots.append(sl.reshape(nwin, wd, wh, ww, C))
    b = jnp.stack(slots, axis=1)
    b = b.reshape(nwin, 3, 3, 3, wd, wh, ww, C)
    b = jnp.transpose(b, (0, 1, 4, 2, 5, 3, 6, 7))
    return b.reshape(nwin, 27 * wd * wh * ww, C)


# ----------------------------------------------------------------------------- Pallas kernel 1: fused norm1+Q / KV projection
def _proj_kernel(x_ref, xa_ref, g1_ref, b1_ref, wq_ref, wkv_ref,
                 q_ref, k_ref, v_ref, *, scale, C):
    x = x_ref[...].astype(jnp.float32)                    # (tile, C)
    xa = xa_ref[...].astype(jnp.float32)
    xn = _layernorm(x, g1_ref[0], b1_ref[0])              # norm1 only on x (ref quirk)
    q = jnp.dot(xn.astype(jnp.bfloat16), wq_ref[...],
                preferred_element_type=jnp.float32) * scale
    kv = jnp.dot(xa.astype(jnp.bfloat16), wkv_ref[...],   # xa NOT normed, no bias
                 preferred_element_type=jnp.float32)
    q_ref[...] = q.astype(q_ref.dtype)
    k_ref[...] = kv[:, :C].astype(k_ref.dtype)
    v_ref[...] = kv[:, C:].astype(v_ref.dtype)


def qkv_project_pallas(x_flat, xa_flat, p, scale):
    T, C = x_flat.shape
    tile = min(512, _round_up(T, 8))
    Tp = _round_up(T, tile)
    if Tp != T:
        x_flat = jnp.pad(x_flat, ((0, Tp - T), (0, 0)))
        xa_flat = jnp.pad(xa_flat, ((0, Tp - T), (0, 0)))
    kernel = functools.partial(_proj_kernel, scale=scale, C=C)
    q, k, v = pl.pallas_call(
        kernel,
        out_shape=(jax.ShapeDtypeStruct((Tp, C), jnp.bfloat16),) * 3,
        grid=(Tp // tile,),
        in_specs=[
            pl.BlockSpec((tile, C), lambda i: (i, 0)),
            pl.BlockSpec((tile, C), lambda i: (i, 0)),
            pl.BlockSpec((1, C), lambda i: (0, 0)),
            pl.BlockSpec((1, C), lambda i: (0, 0)),
            pl.BlockSpec((C, C), lambda i: (0, 0)),
            pl.BlockSpec((C, 2 * C), lambda i: (0, 0)),
        ],
        out_specs=(pl.BlockSpec((tile, C), lambda i: (i, 0)),) * 3,
        compiler_params=pltpu.CompilerParams(
            dimension_semantics=("parallel",), vmem_limit_bytes=VMEM_LIMIT),
    )(x_flat, xa_flat, p["norm1_g"][None], p["norm1_b"][None],
      p["q_w"].astype(jnp.bfloat16), p["kv_w"].astype(jnp.bfloat16))
    return q[:T], k[:T], v[:T]


# ----------------------------------------------------------------------------- Pallas kernel 2: cross-window attention
def _attn_kernel(*refs, num_heads, w, N, C):
    q_ref, sc_ref = refs[0], refs[1]
    kv_refs = refs[2:11]              # 9 neighbour rows, index = od*3 + oh
    wp_ref, bp_ref = refs[11], refs[12]
    o_ref = refs[13]
    ksc, vsc, osc = refs[14], refs[15], refs[16]
    hd = C // num_heads

    # Reference bug: area slot 20 is never written -> all-zero K/V tokens.  With no
    # kv bias their logit is exactly 0 and V is 0, but they stay in the denominator.
    ksc[20 * N:21 * N, :] = jnp.zeros((N, C), jnp.float32)
    vsc[20 * N:21 * N, :] = jnp.zeros((N, C), jnp.float32)

    for kw in range(w):                                   # all windows of this (d,h) row
        # In-kernel 27-neighbourhood gather from the zero-padded window grid
        # (the 27x-duplicated area tensor is never materialised in HBM).
        for od in range(3):
            for oh in range(3):
                r = kv_refs[od * 3 + oh]                  # (1,1,w+2,2,N,C) bf16
                for ow in range(3):
                    slot = od * 9 + oh * 3 + ow
                    if slot == 20:
                        continue
                    ksc[slot * N:(slot + 1) * N, :] = r[0, 0, kw + ow, 0].astype(jnp.float32)
                    vsc[slot * N:(slot + 1) * N, :] = r[0, 0, kw + ow, 1].astype(jnp.float32)
        k_area = ksc[...]                                 # (27N, C) f32
        v_area = vsc[...]
        qk = q_ref[0, 0, kw]                              # (N, C) bf16, pre-scaled

        for hh in range(num_heads):
            qh = qk[:, hh * hd:(hh + 1) * hd]
            kh = k_area[:, hh * hd:(hh + 1) * hd].astype(jnp.bfloat16)
            vh = v_area[:, hh * hd:(hh + 1) * hd].astype(jnp.bfloat16)
            logits = jax.lax.dot_general(qh, kh, (((1,), (1,)), ((), ())),
                                         preferred_element_type=jnp.float32)   # (N, 27N)
            m = jnp.max(logits, axis=-1, keepdims=True)
            e = jnp.exp(logits - m)
            s = jnp.sum(e, axis=-1, keepdims=True)
            attn = (e * pl.reciprocal(s, approx=True)).astype(jnp.bfloat16)
            osc[kw * N:(kw + 1) * N, hh * hd:(hh + 1) * hd] = jnp.dot(
                attn, vh, preferred_element_type=jnp.float32)

    # Single output projection for the whole window batch (hoisted out of the head
    # and window loops); residual add (shortcut + attn) fused into the store.
    proj = jnp.dot(osc[...].astype(jnp.bfloat16), wp_ref[...],
                   preferred_element_type=jnp.float32) + bp_ref[0]
    # TODO(synk): for C < 128 a lane-dense (N*C)-flattened out_spec would avoid masked
    # vst; skipped here to keep cross-tile reshapes out of the kernel (production C>=128
    # is already lane-dense).
    for kw in range(w):
        o_ref[0, 0, kw] = (sc_ref[0, 0, kw].astype(jnp.float32)
                           + proj[kw * N:(kw + 1) * N]).astype(o_ref.dtype)


def _kv_index_map(od, oh):
    return lambda i, j: (i + od, j + oh, 0, 0, 0, 0)


def cross_attn_pallas(qwin, scwin, kv_grid, p, num_heads):
    d, h, w, N, C = qwin.shape
    kernel = functools.partial(_attn_kernel, num_heads=num_heads, w=w, N=N, C=C)
    kv_specs = [pl.BlockSpec((1, 1, w + 2, 2, N, C), _kv_index_map(od, oh))
                for od in range(3) for oh in range(3)]
    return pl.pallas_call(
        kernel,
        out_shape=jax.ShapeDtypeStruct((d, h, w, N, C), scwin.dtype),
        grid=(d, h),
        in_specs=[pl.BlockSpec((1, 1, w, N, C), lambda i, j: (i, j, 0, 0, 0)),
                  pl.BlockSpec((1, 1, w, N, C), lambda i, j: (i, j, 0, 0, 0)),
                  *kv_specs,
                  pl.BlockSpec((C, C), lambda i, j: (0, 0)),
                  pl.BlockSpec((1, C), lambda i, j: (0, 0))],
        out_specs=pl.BlockSpec((1, 1, w, N, C), lambda i, j: (i, j, 0, 0, 0)),
        scratch_shapes=[pltpu.VMEM((27 * N, C), jnp.float32),   # gathered K area
                        pltpu.VMEM((27 * N, C), jnp.float32),   # gathered V area
                        pltpu.VMEM((w * N, C), jnp.float32)],   # pre-proj outputs
        compiler_params=pltpu.CompilerParams(
            dimension_semantics=("parallel", "parallel"),
            vmem_limit_bytes=VMEM_LIMIT),
    )(qwin, scwin, *([kv_grid] * 9),
      p["proj_w"].astype(jnp.bfloat16), p["proj_b"][None])


# ----------------------------------------------------------------------------- Pallas kernel 3: norm2 + MLP (+ residual)
def _mlp_kernel(x_ref, g2_ref, b2_ref, w1_ref, b1_ref, w2_ref, b2b_ref, o_ref):
    x = x_ref[...].astype(jnp.float32)                    # (tile, C)
    xn = _layernorm(x, g2_ref[0], b2_ref[0])
    hpre = jnp.dot(xn.astype(jnp.bfloat16), w1_ref[...],
                   preferred_element_type=jnp.float32) + b1_ref[0]
    hact = _gelu_exact(hpre)                              # nn.GELU default (exact erf)
    y = jnp.dot(hact.astype(jnp.bfloat16), w2_ref[...],
                preferred_element_type=jnp.float32) + b2b_ref[0]
    o_ref[...] = (x + y).astype(o_ref.dtype)              # residual fused


def mlp_pallas(x_flat, p):
    T, C = x_flat.shape
    Hd = p["fc1_w"].shape[1]
    tile = min(512, _round_up(T, 8))
    Tp = _round_up(T, tile)
    xp = jnp.pad(x_flat, ((0, Tp - T), (0, 0))) if Tp != T else x_flat
    out = pl.pallas_call(
        _mlp_kernel,
        out_shape=jax.ShapeDtypeStruct((Tp, C), x_flat.dtype),
        grid=(Tp // tile,),
        in_specs=[
            pl.BlockSpec((tile, C), lambda i: (i, 0)),
            pl.BlockSpec((1, C), lambda i: (0, 0)),
            pl.BlockSpec((1, C), lambda i: (0, 0)),
            pl.BlockSpec((C, Hd), lambda i: (0, 0)),
            pl.BlockSpec((1, Hd), lambda i: (0, 0)),
            pl.BlockSpec((Hd, C), lambda i: (0, 0)),
            pl.BlockSpec((1, C), lambda i: (0, 0)),
        ],
        out_specs=pl.BlockSpec((tile, C), lambda i: (i, 0)),
        compiler_params=pltpu.CompilerParams(
            dimension_semantics=("parallel",), vmem_limit_bytes=VMEM_LIMIT),
    )(xp, p["norm2_g"][None], p["norm2_b"][None],
      p["fc1_w"].astype(jnp.bfloat16), p["fc1_b"][None],
      p["fc2_w"].astype(jnp.bfloat16), p["fc2_b"][None])
    return out[:T]


# ----------------------------------------------------------------------------- block / layer forward (Pallas path)
def forward_part1_pallas(x, xa, p, window_size_cfg, num_heads):
    B, D, H, W, C = x.shape
    assert B == 1, "reference window_area_partition only supports B == 1"
    ws = get_window_size((D, H, W), window_size_cfg)
    pad_d1 = (ws[0] - D % ws[0]) % ws[0]
    pad_b = (ws[1] - H % ws[1]) % ws[1]
    pad_r = (ws[2] - W % ws[2]) % ws[2]
    xp = jnp.pad(x, ((0, 0), (0, pad_d1), (0, pad_b), (0, pad_r), (0, 0)))
    xap = jnp.pad(xa, ((0, 0), (0, pad_d1), (0, pad_b), (0, pad_r), (0, 0)))
    _, Dp, Hp, Wp, _ = xp.shape
    d, h, w = Dp // ws[0], Hp // ws[1], Wp // ws[2]
    N = ws[0] * ws[1] * ws[2]
    scale = (C // num_heads) ** -0.5

    # (1) LN+Q and KV projections done ONCE on the un-duplicated token stream.
    q_flat, k_flat, v_flat = qkv_project_pallas(
        xp.reshape(-1, C), xap.reshape(-1, C), p, scale)

    # (2) window plumbing: pure permutations / zero pads, NO 27x area duplication.
    qwin = window_partition(q_flat.reshape(1, Dp, Hp, Wp, C), ws).reshape(d, h, w, N, C)
    scwin = window_partition(xp, ws).reshape(d, h, w, N, C)          # shortcut (f32)
    kwin = window_partition(k_flat.reshape(1, Dp, Hp, Wp, C), ws).reshape(d, h, w, N, C)
    vwin = window_partition(v_flat.reshape(1, Dp, Hp, Wp, C), ws).reshape(d, h, w, N, C)
    kv_grid = jnp.pad(jnp.stack([kwin, vwin], axis=3),               # (d+2,h+2,w+2,2,N,C)
                      ((1, 1), (1, 1), (1, 1), (0, 0), (0, 0), (0, 0)))

    # (3) attention + out-proj + residual: one (d,h) row of w windows per grid step.
    owin = cross_attn_pallas(qwin, scwin, kv_grid, p, num_heads)

    out = window_reverse(owin.reshape(d * h * w, N, C), ws, B, Dp, Hp, Wp)
    return out[:, :D, :H, :W, :]


def block_forward_pallas(x, xa, p, *, window_size, num_heads):
    x = forward_part1_pallas(x, xa, p, window_size, num_heads)   # shortcut fused in-kernel
    B, D, H, W, C = x.shape
    return mlp_pallas(x.reshape(-1, C), p).reshape(B, D, H, W, C)


def basic_layer_forward(x, xa, blocks, *, window_size, num_heads, block_fn):
    for p in blocks:
        nx = block_fn(x, xa, p, window_size=window_size, num_heads=num_heads)
        nxa = block_fn(xa, x, p, window_size=window_size, num_heads=num_heads)
        x, xa = nx, nxa
    # downsample is None -> (x, xa, x, xa)
    return x, xa, x, xa


# ----------------------------------------------------------------------------- pure-JAX f32 reference (self-check)
def cross_attn_ref(x_win, xa_area, p, num_heads):
    nW, N, C = x_win.shape
    M = xa_area.shape[1]
    hd = C // num_heads
    scale = hd ** -0.5
    xn = _layernorm(x_win, p["norm1_g"], p["norm1_b"])
    q = (xn @ p["q_w"]) * scale
    kv = xa_area @ p["kv_w"]
    k, v = kv[..., :C], kv[..., C:]
    qh = q.reshape(nW, N, num_heads, hd).transpose(0, 2, 1, 3)
    kh = k.reshape(nW, M, num_heads, hd).transpose(0, 2, 1, 3)
    vh = v.reshape(nW, M, num_heads, hd).transpose(0, 2, 1, 3)
    attn = jax.nn.softmax(jnp.einsum("bhnd,bhmd->bhnm", qh, kh), axis=-1)
    o = jnp.einsum("bhnm,bhmd->bhnd", attn, vh).transpose(0, 2, 1, 3).reshape(nW, N, C)
    return o @ p["proj_w"] + p["proj_b"]


def mlp_ref(x_flat, p):
    xn = _layernorm(x_flat, p["norm2_g"], p["norm2_b"])
    h = _gelu_exact(xn @ p["fc1_w"] + p["fc1_b"])
    return x_flat + (h @ p["fc2_w"] + p["fc2_b"])


def forward_part1_ref(x, xa, p, window_size_cfg, num_heads):
    B, D, H, W, C = x.shape
    ws = get_window_size((D, H, W), window_size_cfg)
    pad_d1 = (ws[0] - D % ws[0]) % ws[0]
    pad_b = (ws[1] - H % ws[1]) % ws[1]
    pad_r = (ws[2] - W % ws[2]) % ws[2]
    xp = jnp.pad(x, ((0, 0), (0, pad_d1), (0, pad_b), (0, pad_r), (0, 0)))
    xap = jnp.pad(xa, ((0, 0), (0, pad_d1), (0, pad_b), (0, pad_r), (0, 0)))
    _, Dp, Hp, Wp, _ = xp.shape
    x_windows = window_partition(xp, ws)
    xa_area = window_area_partition(xap, ws)
    attn_windows = cross_attn_ref(x_windows, xa_area, p, num_heads)
    out = window_reverse(attn_windows, ws, B, Dp, Hp, Wp)
    return out[:, :D, :H, :W, :]


def block_forward_ref(x, xa, p, *, window_size, num_heads):
    x = x + forward_part1_ref(x, xa, p, window_size, num_heads)
    B, D, H, W, C = x.shape
    return mlp_ref(x.reshape(-1, C), p).reshape(B, D, H, W, C)


# ----------------------------------------------------------------------------- params
def init_block_params(key, C, mlp_ratio):
    Hd = int(C * mlp_ratio)
    ks = jax.random.split(key, 10)
    std = 0.1
    f32 = jnp.float32
    return dict(
        norm1_g=1.0 + 0.05 * jax.random.normal(ks[0], (C,), f32),
        norm1_b=0.05 * jax.random.normal(ks[1], (C,), f32),
        q_w=std * jax.random.normal(ks[2], (C, C), f32),      # qkv_bias=False (BasicLayer default)
        kv_w=std * jax.random.normal(ks[3], (C, 2 * C), f32),
        proj_w=std * jax.random.normal(ks[4], (C, C), f32),
        proj_b=std * jax.random.normal(ks[5], (C,), f32),
        norm2_g=1.0 + 0.05 * jax.random.normal(ks[6], (C,), f32),
        norm2_b=0.05 * jax.random.normal(ks[7], (C,), f32),
        fc1_w=std * jax.random.normal(ks[8], (C, Hd), f32),
        fc1_b=jnp.zeros((Hd,), f32),
        fc2_w=std * jax.random.normal(ks[9], (Hd, C), f32),
        fc2_b=jnp.zeros((C,), f32),
    )


# ----------------------------------------------------------------------------- main
if __name__ == "__main__":
    # Small config: embed_dim=16, depth=2, num_heads=2, window_size=(2,2,2), mlp_ratio=4
    B, D, H, W, C = 1, 4, 4, 4, 16
    depth, num_heads, window_size, mlp_ratio = 2, 2, (2, 2, 2), 4.0

    key = jax.random.PRNGKey(0)
    kx, kxa, kp = jax.random.split(key, 3)
    x = jax.random.normal(kx, (B, D, H, W, C), jnp.float32)
    xa = jax.random.normal(kxa, (B, D, H, W, C), jnp.float32)
    blocks = [init_block_params(k, C, mlp_ratio) for k in jax.random.split(kp, depth)]

    out_pallas = basic_layer_forward(x, xa, blocks, window_size=window_size,
                                     num_heads=num_heads, block_fn=block_forward_pallas)
    out_pallas = jax.block_until_ready(out_pallas)

    out_ref = basic_layer_forward(x, xa, blocks, window_size=window_size,
                                  num_heads=num_heads, block_fn=block_forward_ref)
    out_ref = jax.block_until_ready(out_ref)

    # bf16 MXU operands + approx reciprocal -> compare against the f32 reference with
    # a correspondingly relaxed tolerance.
    for a, b in zip(out_pallas, out_ref):
        assert a.shape == b.shape and a.dtype == b.dtype
        err = float(jnp.max(jnp.abs(a - b)))
        assert jnp.allclose(a, b, atol=5e-2, rtol=5e-2), f"max abs err = {err}"

    print("KERNEL_OK")
</pallas_src>

<mosaic_0001>
module attributes {stable_mosaic.version = 11 : i64} {
  func.func @_proj_kernel(%arg0: i32, %arg1: memref<64x16xf32, #tpu.memory_space<vmem>>, %arg2: memref<64x16xf32, #tpu.memory_space<vmem>>, %arg3: memref<1x16xf32, #tpu.memory_space<vmem>>, %arg4: memref<1x16xf32, #tpu.memory_space<vmem>>, %arg5: memref<16x16xbf16, #tpu.memory_space<vmem>>, %arg6: memref<16x32xbf16, #tpu.memory_space<vmem>>, %arg7: memref<64x16xbf16, #tpu.memory_space<vmem>>, %arg8: memref<64x16xbf16, #tpu.memory_space<vmem>>, %arg9: memref<64x16xbf16, #tpu.memory_space<vmem>>) attributes {dimension_semantics = [#tpu.dimension_semantics<parallel>], iteration_bounds = array<i64: 1>, scalar_prefetch = 0 : i64, scratch_operands = 0 : i64, tpu.core_type = #tpu.core_type<tc>, window_params = [{transform_indices = @transform_0, window_bounds = array<i64: 64, 16>}, {transform_indices = @transform_1, window_bounds = array<i64: 64, 16>}, {pipeline_mode = #tpu.pipeline_mode<synchronous>, transform_indices = @transform_2, window_bounds = array<i64: 1, 16>}, {pipeline_mode = #tpu.pipeline_mode<synchronous>, transform_indices = @transform_3, window_bounds = array<i64: 1, 16>}, {pipeline_mode = #tpu.pipeline_mode<synchronous>, transform_indices = @transform_4, window_bounds = array<i64: 16, 16>}, {pipeline_mode = #tpu.pipeline_mode<synchronous>, transform_indices = @transform_5, window_bounds = array<i64: 16, 32>}, {transform_indices = @transform_6, window_bounds = array<i64: 64, 16>}, {transform_indices = @transform_7, window_bounds = array<i64: 64, 16>}, {transform_indices = @transform_8, window_bounds = array<i64: 64, 16>}]} {
    %c0 = arith.constant 0 : index
    %c0_0 = arith.constant 0 : index
    %0 = vector.load %arg1[%c0, %c0_0] : memref<64x16xf32, #tpu.memory_space<vmem>>, vector<64x16xf32>
    %c0_1 = arith.constant 0 : index
    %c0_2 = arith.constant 0 : index
    %1 = vector.load %arg2[%c0_1, %c0_2] : memref<64x16xf32, #tpu.memory_space<vmem>>, vector<64x16xf32>
    %c0_3 = arith.constant 0 : index
    %c0_4 = arith.constant 0 : index
    %2 = vector.load %arg3[%c0_3, %c0_4] : memref<1x16xf32, #tpu.memory_space<vmem>>, vector<1x16xf32>
    %3 = vector.shape_cast %2 : vector<1x16xf32> to vector<16xf32>
    %c0_5 = arith.constant 0 : index
    %c0_6 = arith.constant 0 : index
    %4 = vector.load %arg4[%c0_5, %c0_6] : memref<1x16xf32, #tpu.memory_space<vmem>>, vector<1x16xf32>
    %5 = vector.shape_cast %4 : vector<1x16xf32> to vector<16xf32>
    %cst = arith.constant dense<0.000000e+00> : vector<64xf32>
    %6 = vector.multi_reduction <add>, %0, %cst [1] : vector<64x16xf32> to vector<64xf32>
    %7 = vector.shape_cast %6 : vector<64xf32> to vector<64x1xf32>
    %cst_7 = arith.constant 1.600000e+01 : f32
    %8 = vector.broadcast %cst_7 : f32 to vector<64x1xf32>
    %9 = arith.divf %7, %8 : vector<64x1xf32>
    %10 = vector.broadcast %9 : vector<64x1xf32> to vector<64x16xf32>
    %11 = arith.subf %0, %10 : vector<64x16xf32>
    %12 = arith.mulf %11, %11 : vector<64x16xf32>
    %cst_8 = arith.constant dense<0.000000e+00> : vector<64xf32>
    %13 = vector.multi_reduction <add>, %12, %cst_8 [1] : vector<64x16xf32> to vector<64xf32>
    %14 = vector.shape_cast %13 : vector<64xf32> to vector<64x1xf32>
    %cst_9 = arith.constant 1.600000e+01 : f32
    %15 = vector.broadcast %cst_9 : f32 to vector<64x1xf32>
    %16 = arith.divf %14, %15 : vector<64x1xf32>
    %17 = vector.broadcast %9 : vector<64x1xf32> to vector<64x16xf32>
    %18 = arith.subf %0, %17 : vector<64x16xf32>
    %cst_10 = arith.constant 9.99999974E-6 : f32
    %19 = vector.broadcast %cst_10 : f32 to vector<64x1xf32>
    %20 = arith.addf %16, %19 : vector<64x1xf32>
    %21 = math.rsqrt %20 : vector<64x1xf32>
    %22 = vector.broadcast %21 : vector<64x1xf32> to vector<64x16xf32>
    %23 = arith.mulf %18, %22 : vector<64x16xf32>
    %24 = vector.shape_cast %3 : vector<16xf32> to vector<1x16xf32>
    %25 = vector.broadcast %24 : vector<1x16xf32> to vector<64x16xf32>
    %26 = arith.mulf %23, %25 : vector<64x16xf32>
    %27 = vector.shape_cast %5 : vector<16xf32> to vector<1x16xf32>
    %28 = vector.broadcast %27 : vector<1x16xf32> to vector<64x16xf32>
    %29 = arith.addf %26, %28 : vector<64x16xf32>
    %30 = arith.truncf %29 : vector<64x16xf32> to vector<64x16xbf16>
    %c0_11 = arith.constant 0 : index
    %c0_12 = arith.constant 0 : index
    %31 = vector.load %arg5[%c0_11, %c0_12] : memref<16x16xbf16, #tpu.memory_space<vmem>>, vector<16x16xbf16>
    %cst_13 = arith.constant dense<0.000000e+00> : vector<64x16xf32>
    %32 = tpu.matmul %30, %31, %cst_13 {dimension_numbers = #tpu.dot_dimension_numbers<[1], [0], [0], [1], [0, 0, 1, 1], [], []>} : vector<64x16xbf16>, vector<16x16xbf16>, vector<64x16xf32> -> vector<64x16xf32>
    %cst_14 = arith.constant 0.353553385 : f32
    %33 = vector.broadcast %cst_14 : f32 to vector<64x16xf32>
    %34 = arith.mulf %32, %33 : vector<64x16xf32>
    %35 = arith.truncf %1 : vector<64x16xf32> to vector<64x16xbf16>
    %c0_15 = arith.constant 0 : index
    %c0_16 = arith.constant 0 : index
    %36 = vector.load %arg6[%c0_15, %c0_16] : memref<16x32xbf16, #tpu.memory_space<vmem>>, vector<16x32xbf16>
    %cst_17 = arith.constant dense<0.000000e+00> : vector<64x32xf32>
    %37 = tpu.matmul %35, %36, %cst_17 {dimension_numbers = #tpu.dot_dimension_numbers<[1], [0], [0], [1], [0, 0, 1, 1], [], []>} : vector<64x16xbf16>, vector<16x32xbf16>, vector<64x32xf32> -> vector<64x32xf32>
    %38 = arith.truncf %34 : vector<64x16xf32> to vector<64x16xbf16>
    %c0_18 = arith.constant 0 : index
    %c0_19 = arith.constant 0 : index
    %39 = vector.load %arg7[%c0_18, %c0_19] : memref<64x16xbf16, #tpu.memory_space<vmem>>, vector<64x16xbf16>
    tpu.vector_store %arg7[%c0_18, %c0_19], %38 {strides = array<i32>} : memref<64x16xbf16, #tpu.memory_space<vmem>>, vector<64x16xbf16>,
    %40 = vector.extract_strided_slice %37 {offsets = [0, 0], sizes = [64, 16], strides = [1, 1]} : vector<64x32xf32> to vector<64x16xf32>
    %41 = arith.truncf %40 : vector<64x16xf32> to vector<64x16xbf16>
    %c0_20 = arith.constant 0 : index
    %c0_21 = arith.constant 0 : index
    %42 = vector.load %arg8[%c0_20, %c0_21] : memref<64x16xbf16, #tpu.memory_space<vmem>>, vector<64x16xbf16>
    tpu.vector_store %arg8[%c0_20, %c0_21], %41 {strides = array<i32>} : memref<64x16xbf16, #tpu.memory_space<vmem>>, vector<64x16xbf16>,
    %43 = vector.extract_strided_slice %37 {offsets = [0, 16], sizes = [64, 16], strides = [1, 1]} : vector<64x32xf32> to vector<64x16xf32>
    %44 = arith.truncf %43 : vector<64x16xf32> to vector<64x16xbf16>
    %c0_22 = arith.constant 0 : index
    %c0_23 = arith.constant 0 : index
    %45 = vector.load %arg9[%c0_22, %c0_23] : memref<64x16xbf16, #tpu.memory_space<vmem>>, vector<64x16xbf16>
    tpu.vector_store %arg9[%c0_22, %c0_23], %44 {strides = array<i32>} : memref<64x16xbf16, #tpu.memory_space<vmem>>, vector<64x16xbf16>,
    return
  }
  func.func @transform_0(%arg0: i32) -> (i32, i32) {
    %c0_i32 = arith.constant 0 : i32
    %c0_i32_0 = arith.constant 0 : i32
    return %arg0, %c0_i32 : i32, i32
  }
  func.func @transform_1(%arg0: i32) -> (i32, i32) {
    %c0_i32 = arith.constant 0 : i32
    %c0_i32_0 = arith.constant 0 : i32
    return %arg0, %c0_i32 : i32, i32
  }
  func.func @transform_2(%arg0: i32) -> (i32, i32) {
    %c0_i32 = arith.constant 0 : i32
    %c0_i32_0 = arith.constant 0 : i32
    %c0_i32_1 = arith.constant 0 : i32
    return %c0_i32, %c0_i32_0 : i32, i32
  }
  func.func @transform_3(%arg0: i32) -> (i32, i32) {
    %c0_i32 = arith.constant 0 : i32
    %c0_i32_0 = arith.constant 0 : i32
    %c0_i32_1 = arith.constant 0 : i32
    return %c0_i32, %c0_i32_0 : i32, i32
  }
  func.func @transform_4(%arg0: i32) -> (i32, i32) {
    %c0_i32 = arith.constant 0 : i32
    %c0_i32_0 = arith.constant 0 : i32
    %c0_i32_1 = arith.constant 0 : i32
    return %c0_i32, %c0_i32_0 : i32, i32
  }
  func.func @transform_5(%arg0: i32) -> (i32, i32) {
    %c0_i32 = arith.constant 0 : i32
    %c0_i32_0 = arith.constant 0 : i32
    %c0_i32_1 = arith.constant 0 : i32
    return %c0_i32, %c0_i32_0 : i32, i32
  }
  func.func @transform_6(%arg0: i32) -> (i32, i32) {
    %c0_i32 = arith.constant 0 : i32
    %c0_i32_0 = arith.constant 0 : i32
    return %arg0, %c0_i32 : i32, i32
  }
  func.func @transform_7(%arg0: i32) -> (i32, i32) {
    %c0_i32 = arith.constant 0 : i32
    %c0_i32_0 = arith.constant 0 : i32
    return %arg0, %c0_i32 : i32, i32
  }
  func.func @transform_8(%arg0: i32) -> (i32, i32) {
    %c0_i32 = arith.constant 0 : i32
    %c0_i32_0 = arith.constant 0 : i32
    return %arg0, %c0_i32 : i32, i32
  }
}

</mosaic_0001>

<bundles_post_ra>
// kernel: tpu_custom_call.1
= control target key start
LH: loop header
LB: loop body
LE: loop exit
PB: predicated region body
PF: predicated region fallthrough
CT: control target
= control target key end

     0   :  { %vm45_vm0 = vcmask 130048   ;;  %vm397_vm1 = vcmask 125952   ;;  %s583_s18 = smov 112   ;;  %s857_s0 = inlined_call_operand.vmem [shape: f32[64,16], index: 0, kind: input, shape index: {}]   ;;  %s858_s5 = inlined_call_operand.vmem [shape: bf16[16,32], index: 5, kind: input, shape index: {}]   ;;  %s859_s1 = inlined_call_operand.vmem [shape: f32[64,16], index: 1, kind: input, shape index: {}]   ;;  %s860_s4 = inlined_call_operand.vmem [shape: bf16[16,16], index: 4, kind: input, shape index: {}]   ;;  %s861_s7 = inlined_call_operand.vmem [shape: bf16[64,16], index: 7, kind: output, shape index: {1}]   ;;  %s862_s2 = inlined_call_operand.vmem [shape: f32[1,16], index: 2, kind: input, shape index: {}]   ;;  %s863_s3 = inlined_call_operand.vmem [shape: f32[1,16], index: 3, kind: input, shape index: {}]   ;;  %s864_s8 = inlined_call_operand.vmem [shape: bf16[64,16], index: 8, kind: output, shape index: {2}]   ;;  %s865_s6 = inlined_call_operand.vmem [shape: bf16[64,16], index: 6, kind: output, shape index: {0}]  }
   0x1   :  { %v27_v0 = vld [vmem:[%s857_s0] sm:$0xff]  ;;  %v29_v1 = vld [vmem:[%s857_s0 + $0x10] sm:$0xff]  ;;  %v28_v2 = vld [vmem:[%s857_s0 + $0x8] sm:$0xff] }
   0x2   :  { %v46_v3 = vsel %vm45_vm0, %v27_v0, 0.0  ;;  %v52_v4 = vsel %vm45_vm0, %v29_v1, 0.0  ;;  %v30_v5 = vld [vmem:[%s857_s0 + $0x18] sm:$0xff]  ;;  %v49_v6 = vsel %vm45_vm0, %v28_v2, 0.0  ;;  %v31_v8 = vld [vmem:[%s857_s0 + $0x20] sm:$0xff]  ;;  %v32_v9 = vld [vmem:[%s857_s0 + $0x28] sm:$0xff] }
   0x3   :  { %47 = vadd.xlane.f32.xlu0 %v46_v3  ;;  %53 = vadd.xlane.f32.xlu1 %v52_v4  ;;  %v55_v7 = vsel %vm45_vm0, %v30_v5, 0.0  ;;  %v58_v10 = vsel %vm45_vm0, %v31_v8, 0.0  ;;  %v61_v11 = vsel %vm45_vm0, %v32_v9, 0.0  ;;  %v656_v12 = vld [vmem:[%s857_s0 + $0x30] sm:$0xff]  ;;  %v661_v13 = vld [vmem:[%s857_s0 + $0x38] sm:$0xff]  ;;  %v565_v16 = vld [vmem:[%s858_s5] sm:$0xff]  }
   0x4   :  { %v64_v14 = vsel %vm45_vm0, %v656_v12, 0.0  ;;  %v67_v15 = vsel %vm45_vm0, %v661_v13, 0.0  ;;  %v35_v17 = vld [vmem:[%s859_s1] sm:$0xff]  ;;  %v36_v18 = vld [vmem:[%s859_s1 + $0x8] sm:$0xff]  ;;  %v37_v19 = vld [vmem:[%s859_s1 + $0x10] sm:$0xff]  ;;  %554 = vmatprep.subr.bf16.mxu1 %v565_v16 }
   0x5   :  { %v276_v20 = vpack.c.bf16 %v36_v18, %v35_v17  ;;  %v38_v21 = vld [vmem:[%s859_s1 + $0x18] sm:$0xff]  ;;  %v39_v22 = vld [vmem:[%s859_s1 + $0x20] sm:$0xff]  ;;  %v40_v23 = vld [vmem:[%s859_s1 + $0x28] sm:$0xff]  ;;  %555 = vmatpush3.bf16.msra.mxu1 %v565_v16 }
   0x6   :  { %v277_v24 = vpack.c.bf16 %v38_v21, %v37_v19  ;;  %v278_v25 = vpack.c.bf16 %v40_v23, %v39_v22  ;;  %v41_v26 = vld [vmem:[%s859_s1 + $0x30] sm:$0xff]  ;;  %v42_v27 = vld [vmem:[%s859_s1 + $0x38] sm:$0xff] }
   0x7   :  { %50 = vadd.xlane.f32.xlu0 %v49_v6  ;;  %56 = vadd.xlane.f32.xlu1 %v55_v7  ;;  %v279_v28 = vpack.c.bf16 %v42_v27, %v41_v26 }
   0x8   :  { %556 = vmatprep.mubr.msk.bf16.mxu1 %vm45_vm0, %v276_v20 }
   0x9   :  { %557 = vmatmul.mubr.msk.bf16.vlgmr.msra.gmra.mrb[0].mxu1 %vm45_vm0, %v277_v24 }
   0xa   :  { %560 = vmatprep.mubr.msk.bf16.mxu1 %vm45_vm0, %v278_v25 }
   0xb   :  { %59 = vadd.xlane.f32.xlu0 %v58_v10  ;;  %62 = vadd.xlane.f32.xlu1 %v61_v11 }
   0xf   :  { %65 = vadd.xlane.f32.xlu0 %v64_v14  ;;  %68 = vadd.xlane.f32.xlu1 %v67_v15 }
  0x11   :  { %561 = vmatmul.mubr.msk.bf16.gmra.mrb[4].mxu1 %vm45_vm0, %v279_v28 }
  0x90   :  { %v48_v29 = vpop.xlane.xlu0 %47  ;;  %v54_v30 = vpop.xlane.xlu1 %53 }
  0x91   :  { %v71_v31 = vmul.f32 0.0625, %v48_v29  ;;  %v73_v32 = vmul.f32 0.0625, %v54_v30 }
  0x93   :  { %v698_v33 = vsub.f32 %v27_v0, %v71_v31  ;;  %v700_v34 = vsub.f32 %v29_v1, %v73_v32 }
  0x94   :  { %v51_v35 = vpop.xlane.xlu0 %50  ;;  %v57_v36 = vpop.xlane.xlu1 %56 }
  0x95   :  { %v72_v37 = vmul.f32 0.0625, %v51_v35  ;;  %v74_v38 = vmul.f32 0.0625, %v57_v36  ;;  %v87_v39 = vmul.f32 %v698_v33, %v698_v33  ;;  %v89_v40 = vmul.f32 %v700_v34, %v700_v34 }
  0x97   :  { %v706_v41 = vsub.f32 %v28_v2, %v72_v37  ;;  %v708_v42 = vsub.f32 %v30_v5, %v74_v38  ;;  %v95_v43 = vsel %vm45_vm0, %v87_v39, 0.0  ;;  %v101_v46 = vsel %vm45_vm0, %v89_v40, 0.0  ;;  %v566_v5 = vld [vmem:[%s860_s4] sm:$0xff]  }
  0x98   :  { %96 = vadd.xlane.f32.xlu0 %v95_v43  ;;  %v60_v44 = vpop.xlane.xlu0 %59  ;;  %v63_v45 = vpop.xlane.xlu1 %62  ;;  %544 = vmatprep.subr.bf16.mxu0 %v566_v5 }
  0x99   :  { %v75_v47 = vmul.f32 0.0625, %v60_v44  ;;  %v76_v48 = vmul.f32 0.0625, %v63_v45  ;;  %v88_v49 = vmul.f32 %v706_v41, %v706_v41  ;;  %v90_v50 = vmul.f32 %v708_v42, %v708_v42  ;;  %545 = vmatpush3.bf16.msra.mxu0 %v566_v5 }
  0x9b   :  { %v716_v51 = vsub.f32 %v31_v8, %v75_v47  ;;  %v718_v52 = vsub.f32 %v32_v9, %v76_v48  ;;  %v98_v53 = vsel %vm45_vm0, %v88_v49, 0.0  ;;  %v104_v56 = vsel %vm45_vm0, %v90_v50, 0.0 }
  0x9c   :  { %102 = vadd.xlane.f32.xlu0 %v101_v46  ;;  %99 = vadd.xlane.f32.xlu1 %v98_v53  ;;  %v66_v54 = vpop.xlane.xlu0 %65  ;;  %v69_v55 = vpop.xlane.xlu1 %68  ;;  %v490_v53 = vld [vmem:[%s862_s2] ss:$0 sm:$0xff] }
  0x9d   :  { %v77_v57 = vmul.f32 0.0625, %v66_v54  ;;  %v78_v58 = vmul.f32 0.0625, %v69_v55  ;;  %v91_v59 = vmul.f32 %v716_v51, %v716_v51  ;;  %v92_v60 = vmul.f32 %v718_v52, %v718_v52 }
  0x9f   :  { %v727_v61 = vsub.f32 %v656_v12, %v77_v57  ;;  %v730_v62 = vsub.f32 %v661_v13, %v78_v58  ;;  %v107_v63 = vsel %vm45_vm0, %v91_v59, 0.0  ;;  %v110_v0 = vsel %vm45_vm0, %v92_v60, 0.0 }
  0xa0   :  { %105 = vadd.xlane.f32.xlu1 %v104_v56  ;;  %108 = vadd.xlane.f32.xlu0 %v107_v63 }
  0xa1   :  { %v93_v1 = vmul.f32 %v727_v61, %v727_v61  ;;  %v94_v2 = vmul.f32 %v730_v62, %v730_v62 }
  0xa3   :  { %v113_v3 = vsel %vm45_vm0, %v93_v1, 0.0  ;;  %v116_v4 = vsel %vm45_vm0, %v94_v2, 0.0 }
  0xa4   :  { %111 = vadd.xlane.f32.xlu1 %v110_v0  ;;  %114 = vadd.xlane.f32.xlu0 %v113_v3 }
  0xa8   :  { %117 = vadd.xlane.f32.xlu1 %v116_v4 }
  0xdc   :  { %v558_v6 = vpop.f32.mrb[0].mxu1 }
  0xdd   :  { %v528_v7 = vpack.c.bf16 %v558_v6, %v558_v6  ;;  %v334_v8 = vpop.f32.mrb[1].mxu1 }
  0xde   :  { %v526_v9 = vpack.c.bf16 %v334_v8, %v334_v8  ;;  %v559_v10 = vpop.f32.mrb[2].mxu1 }
  0xdf   :  { %440 = vst.msk [vmem:[%s861_s7 + $0x8] sm:$0xf] %vm397_vm1, %v528_v7  ;;  %450 = vrot.lane.b32.xlu1 %v528_v7, %s583_s18  ;;  %v529_v11 = vpack.c.bf16 %v559_v10, %v559_v10  ;;  %v337_v12 = vpop.f32.mrb[3].mxu1 }
  0xe0   :  { %438 = vst.msk [vmem:[%s861_s7] sm:$0xf] %vm397_vm1, %v526_v9  ;;  %v527_v13 = vpack.c.bf16 %v337_v12, %v337_v12  ;;  %446 = vrot.lane.b32.xlu0 %v526_v9, %s583_s18 }
  0xe1   :  { %441 = vst.msk [vmem:[%s861_s7 + $0xc] sm:$0xf] %vm397_vm1, %v529_v11 }
  0xe2   :  { %439 = vst.msk [vmem:[%s861_s7 + $0x4] sm:$0xf] %vm397_vm1, %v527_v13 }
  0xe3   :  { %452 = vrot.lane.b32.xlu1 %v529_v11, %s583_s18 }
  0xe4   :  { %v562_v14 = vpop.f32.mrb[4].mxu1 }
  0xe5   :  { %v532_v15 = vpack.c.bf16 %v562_v14, %v562_v14  ;;  %v350_v16 = vpop.f32.mrb[5].mxu1 }
  0xe6   :  { %v530_v17 = vpack.c.bf16 %v350_v16, %v350_v16  ;;  %v563_v18 = vpop.f32.mrb[6].mxu1 }
  0xe7   :  { %444 = vst.msk [vmem:[%s861_s7 + $0x18] sm:$0xf] %vm397_vm1, %v532_v15  ;;  %448 = vrot.lane.b32.xlu1 %v527_v13, %s583_s18  ;;  %v533_v19 = vpack.c.bf16 %v563_v18, %v563_v18  ;;  %v353_v20 = vpop.f32.mrb[7].mxu1 }
  0xe8   :  { %442 = vst.msk [vmem:[%s861_s7 + $0x10] sm:$0xf] %vm397_vm1, %v530_v17  ;;  %v531_v21 = vpack.c.bf16 %v353_v20, %v353_v20  ;;  %454 = vrot.lane.b32.xlu0 %v530_v17, %s583_s18 }
  0xe9   :  { %445 = vst.msk [vmem:[%s861_s7 + $0x1c] sm:$0xf] %vm397_vm1, %v533_v19 }
  0xea   :  { %443 = vst.msk [vmem:[%s861_s7 + $0x14] sm:$0xf] %vm397_vm1, %v531_v21 }
  0xeb   :  { %456 = vrot.lane.b32.xlu1 %v531_v21, %s583_s18 }
  0xec   :  { %458 = vrot.lane.b32.xlu0 %v532_v15, %s583_s18 }
  0xef   :  { %460 = vrot.lane.b32.xlu1 %v533_v19, %s583_s18 }
 0x125   :  { %v97_v22 = vpop.xlane.xlu0 %96 }
 0x126   :  { %v119_v23 = vmul.f32 0.0625, %v97_v22 }
 0x128   :  { %v127_v24 = vadd.f32 1e-05, %v119_v23 }
 0x129   :  { %v100_v25 = vpop.xlane.xlu1 %99  ;;  %v103_v26 = vpop.xlane.xlu0 %102 }
 0x12a   :  { %567 = vrsqrt.f32 %v127_v24  ;;  %v120_v27 = vmul.f32 0.0625, %v100_v25  ;;  %v121_v28 = vmul.f32 0.0625, %v103_v26 }
 0x12c   :  { %v128_v29 = vadd.f32 1e-05, %v120_v27  ;;  %v129_v30 = vadd.f32 1e-05, %v121_v28 }
 0x12d   :  { %v106_v31 = vpop.xlane.xlu1 %105  ;;  %v109_v32 = vpop.xlane.xlu0 %108 }
 0x12e   :  { %569 = vrsqrt.f32 %v128_v29  ;;  %v122_v35 = vmul.f32 0.0625, %v106_v31  ;;  %v123_v36 = vmul.f32 0.0625, %v109_v32 }
 0x12f   :  { %571 = vrsqrt.f32 %v129_v30 }
 0x130   :  { %v130_v37 = vadd.f32 1e-05, %v122_v35  ;;  %v131_v38 = vadd.f32 1e-05, %v123_v36 }
 0x131   :  { %v112_v39 = vpop.xlane.xlu1 %111  ;;  %v115_v40 = vpop.xlane.xlu0 %114 }
 0x132   :  { %573 = vrsqrt.f32 %v130_v37  ;;  %v124_v43 = vmul.f32 0.0625, %v112_v39  ;;  %v125_v44 = vmul.f32 0.0625, %v115_v40 }
 0x133   :  { %575 = vrsqrt.f32 %v131_v38 }
 0x134   :  { %v568_v45 = vpop.eup %567  ;;  %v132_v46 = vadd.f32 1e-05, %v124_v43  ;;  %v133_v47 = vadd.f32 1e-05, %v125_v44 }
 0x135   :  { %v118_v48 = vpop.xlane.xlu1 %117  ;;  %v143_v49 = vmul.f32 %v568_v45, %v698_v33  ;;  %v491_v33 = vld [vmem:[%s863_s3] ss:$0 sm:$0xff] }
 0x136   :  { %577 = vrsqrt.f32 %v132_v46  ;;  %v126_v50 = vmul.f32 0.0625, %v118_v48 }
 0x137   :  { %579 = vrsqrt.f32 %v133_v47  ;;  %v157_v58 = vmul.f32 %v490_v53, %v143_v49 }
 0x138   :  { %v570_v54 = vpop.eup %569  ;;  %v134_v55 = vadd.f32 1e-05, %v126_v50 }
 0x139   :  { %v572_v56 = vpop.eup %571  ;;  %v144_v57 = vmul.f32 %v570_v54, %v706_v41  ;;  %v171_v2 = vadd.f32 %v491_v33, %v157_v58 }
 0x13a   :  { %v145_v59 = vmul.f32 %v572_v56, %v700_v34  ;;  %581 = vrsqrt.f32 %v134_v55 }
 0x13b   :  { %v158_v60 = vmul.f32 %v490_v53, %v144_v57 }
 0x13c   :  { %v574_v63 = vpop.eup %573  ;;  %v159_v4 = vmul.f32 %v490_v53, %v145_v59 }
 0x13d   :  { %v576_v0 = vpop.eup %575  ;;  %v146_v1 = vmul.f32 %v574_v63, %v708_v42  ;;  %v172_v3 = vadd.f32 %v491_v33, %v158_v60 }
 0x13e   :  { %v147_v5 = vmul.f32 %v576_v0, %v716_v51  ;;  %v173_v9 = vadd.f32 %v491_v33, %v159_v4 }
 0x13f   :  { %v179_v6 = vpack.c.bf16 %v172_v3, %v171_v2  ;;  %v160_v41 = vmul.f32 %v490_v53, %v146_v1 }
 0x140   :  { %v578_v7 = vpop.eup %577  ;;  %v161_v11 = vmul.f32 %v490_v53, %v147_v5 }
 0x141   :  { %v580_v8 = vpop.eup %579  ;;  %v148_v34 = vmul.f32 %v578_v7, %v718_v52  ;;  %546 = vmatprep.mubr.msk.bf16.mxu0 %vm45_vm0, %v179_v6  ;;  %v174_v10 = vadd.f32 %v491_v33, %v160_v41 }
 0x142   :  { %v149_v12 = vmul.f32 %v580_v8, %v727_v61  ;;  %v175_v51 = vadd.f32 %v491_v33, %v161_v11 }
 0x143   :  { %v180_v13 = vpack.c.bf16 %v174_v10, %v173_v9  ;;  %v162_v42 = vmul.f32 %v490_v53, %v148_v34 }
 0x144   :  { %v582_v14 = vpop.eup %581  ;;  %v163_v17 = vmul.f32 %v490_v53, %v149_v12 }
 0x145   :  { %v150_v15 = vmul.f32 %v582_v14, %v730_v62  ;;  %547 = vmatmul.mubr.msk.bf16.vlgmr.msra.gmra.mrb[0].mxu0 %vm45_vm0, %v180_v13  ;;  %v176_v16 = vadd.f32 %v491_v33, %v162_v42 }
 0x146   :  { %v177_v52 = vadd.f32 %v491_v33, %v163_v17 }
 0x147   :  { %v181_v18 = vpack.c.bf16 %v176_v16, %v175_v51  ;;  %v164_v19 = vmul.f32 %v490_v53, %v150_v15 }
 0x149   :  { %550 = vmatprep.mubr.msk.bf16.mxu0 %vm45_vm0, %v181_v18  ;;  %v178_v20 = vadd.f32 %v491_v33, %v164_v19 }
 0x14b   :  { %v182_v21 = vpack.c.bf16 %v178_v20, %v177_v52 }
 0x14d   :  { %551 = vmatmul.mubr.msk.bf16.gmra.mrb[4].mxu0 %vm45_vm0, %v182_v21 }
 0x151   :  { %v451_v61 = vpop.permute.xlu1 %450 }
 0x152   :  { %472 = vst.msk [vmem:[%s864_s8 + $0x8] sm:$0xf] %vm397_vm1, %v451_v61  ;;  %v447_v62 = vpop.permute.xlu0 %446 }
 0x153   :  { %470 = vst.msk [vmem:[%s864_s8] sm:$0xf] %vm397_vm1, %v447_v62 }
 0x155   :  { %v453_v22 = vpop.permute.xlu1 %452 }
 0x156   :  { %473 = vst.msk [vmem:[%s864_s8 + $0xc] sm:$0xf] %vm397_vm1, %v453_v22 }
 0x159   :  { %v449_v23 = vpop.permute.xlu1 %448 }
 0x15a   :  { %471 = vst.msk [vmem:[%s864_s8 + $0x4] sm:$0xf] %vm397_vm1, %v449_v23  ;;  %v455_v25 = vpop.permute.xlu0 %454 }
 0x15b   :  { %474 = vst.msk [vmem:[%s864_s8 + $0x10] sm:$0xf] %vm397_vm1, %v455_v25 }
 0x15d   :  { %v457_v24 = vpop.permute.xlu1 %456 }
 0x15e   :  { %475 = vst.msk [vmem:[%s864_s8 + $0x14] sm:$0xf] %vm397_vm1, %v457_v24  ;;  %v459_v27 = vpop.permute.xlu0 %458 }
 0x15f   :  { %476 = vst.msk [vmem:[%s864_s8 + $0x18] sm:$0xf] %vm397_vm1, %v459_v27 }
 0x161   :  { %v461_v26 = vpop.permute.xlu1 %460 }
 0x162   :  { %477 = vst.msk [vmem:[%s864_s8 + $0x1c] sm:$0xf] %vm397_vm1, %v461_v26 }
 0x218   :  { %v548_v28 = vpop.f32.mrb[0].mxu0 }
 0x219   :  { %v270_v29 = vmul.f32 0.35355338, %v548_v28  ;;  %v237_v30 = vpop.f32.mrb[1].mxu0 }
 0x21a   :  { %v268_v31 = vmul.f32 0.35355338, %v237_v30  ;;  %v549_v32 = vpop.f32.mrb[2].mxu0 }
 0x21b   :  { %v520_v35 = vpack.c.bf16 %v270_v29, %v270_v29  ;;  %v271_v36 = vmul.f32 0.35355338, %v549_v32  ;;  %v240_v37 = vpop.f32.mrb[3].mxu0 }
 0x21c   :  { %v518_v38 = vpack.c.bf16 %v268_v31, %v268_v31  ;;  %v269_v39 = vmul.f32 0.35355338, %v240_v37 }
 0x21d   :  { %400 = vst.msk [vmem:[%s865_s6 + $0x8] sm:$0xf] %vm397_vm1, %v520_v35  ;;  %v521_v40 = vpack.c.bf16 %v271_v36, %v271_v36 }
 0x21e   :  { %398 = vst.msk [vmem:[%s865_s6] sm:$0xf] %vm397_vm1, %v518_v38  ;;  %v519_v43 = vpack.c.bf16 %v269_v39, %v269_v39 }
 0x21f   :  { %401 = vst.msk [vmem:[%s865_s6 + $0xc] sm:$0xf] %vm397_vm1, %v521_v40 }
 0x220   :  { %399 = vst.msk [vmem:[%s865_s6 + $0x4] sm:$0xf] %vm397_vm1, %v519_v43  ;;  %v552_v44 = vpop.f32.mrb[4].mxu0 }
 0x221   :  { %v274_v45 = vmul.f32 0.35355338, %v552_v44  ;;  %v253_v46 = vpop.f32.mrb[5].mxu0 }
 0x222   :  { %v272_v47 = vmul.f32 0.35355338, %v253_v46  ;;  %v553_v48 = vpop.f32.mrb[6].mxu0 }
 0x223   :  { %v524_v49 = vpack.c.bf16 %v274_v45, %v274_v45  ;;  %v275_v50 = vmul.f32 0.35355338, %v553_v48  ;;  %v256_v53 = vpop.f32.mrb[7].mxu0 }
 0x224   :  { %v522_v54 = vpack.c.bf16 %v272_v47, %v272_v47  ;;  %v273_v55 = vmul.f32 0.35355338, %v256_v53 }
 0x225   :  { %404 = vst.msk [vmem:[%s865_s6 + $0x18] sm:$0xf] %vm397_vm1, %v524_v49  ;;  %v525_v56 = vpack.c.bf16 %v275_v50, %v275_v50 }
 0x226   :  { %402 = vst.msk [vmem:[%s865_s6 + $0x10] sm:$0xf] %vm397_vm1, %v522_v54  ;;  %v523_v57 = vpack.c.bf16 %v273_v55, %v273_v55 }
 0x227   :  { %405 = vst.msk [vmem:[%s865_s6 + $0x1c] sm:$0xf] %vm397_vm1, %v525_v56 }
 0x228   :  { %403 = vst.msk [vmem:[%s865_s6 + $0x14] sm:$0xf] %vm397_vm1, %v523_v57 }

</bundles_post_ra>
